<compile_context>
chip_gen: v6e
topology: v6e:2x2x1
jax: 0.10.0
libtpu: 0.0.40
codegen_flags: <defaults>
</compile_context>

<pallas_src>
import numpy as np
import jax
import jax.numpy as jnp
from jax import lax
from jax.experimental import pallas as pl
from jax.experimental.pallas import tpu as pltpu


# --------------------- pltpu.roll semantics probe ----------------------------

def _probe_roll_is_jnp_like():
    """One-time probe (run OUTSIDE jit): does pltpu.roll follow jnp.roll
    semantics, i.e. result[i] == x[(i - shift) % n]?  Used so the in-kernel
    halo shifts are correct regardless of the rotate convention."""
    def kernel(x_ref, o_ref):
        o_ref[...] = pltpu.roll(x_ref[...], 1, 0)

    x = jnp.arange(8 * 128, dtype=jnp.float32).reshape(8, 128)
    y = pl.pallas_call(
        kernel, out_shape=jax.ShapeDtypeStruct((8, 128), jnp.float32))(x)
    return bool(np.asarray(y)[0, 0] == np.asarray(x)[7, 0])


def _shift_rows(x, s, roll_like_jnp):
    """Return t with t[r] = x[(r + s) % n] along axis 0 (sublane rotate, XLU).
    Rows whose source wrapped around must be masked by the caller."""
    n = x.shape[0]
    if s % n == 0:
        return x
    shift = (-s) % n if roll_like_jnp else s % n
    return pltpu.roll(x, shift, 0)


# ----------------------------- in-kernel ops ----------------------------------

def _conv3x3_relu(x, w_ref, b_ref, H, W, roll_like_jnp, residual=None,
                  tile_m=128):
    """3x3 'same' conv + folded-BN bias + ReLU on a spatially flattened VMEM
    activation value x of shape (H*W, Cin) (channels on lanes).

    Halo: per-tap sublane rotate + row-validity mask (no padding, no HBM).
    Matmuls: 9 MXU matmuls (one per tap, K=Cin) accumulated in f32, chunked
    over M rows so the accumulator fits in vregs.
    w_ref: (9, Cin, Cout) VMEM ref; b_ref: (1, Cout) VMEM ref.
    """
    HW = H * W
    Cout = w_ref.shape[-1]
    row = lax.broadcasted_iota(jnp.int32, (HW, 1), 0)
    h = row // W
    wc = row % W

    taps = []
    for dy in (-1, 0, 1):
        for dx in (-1, 0, 1):
            s = dy * W + dx
            t = _shift_rows(x, s, roll_like_jnp)
            if s != 0:
                valid = ((h + dy >= 0) & (h + dy < H)
                         & (wc + dx >= 0) & (wc + dx < W))
                t = jnp.where(valid, t, 0.0)
            taps.append(t)

    bias = b_ref[...]                                     # (1, Cout)
    tile_m = min(tile_m, HW)
    outs = []
    for m0 in range(0, HW, tile_m):
        acc = jnp.zeros((tile_m, Cout), jnp.float32)
        for k in range(9):
            acc = acc + jnp.dot(taps[k][m0:m0 + tile_m, :], w_ref[k],
                                preferred_element_type=jnp.float32)
        y = jnp.maximum(acc + bias, 0.0)                  # folded-BN bias + ReLU
        if residual is not None:
            y = y + residual[m0:m0 + tile_m, :]           # res(x) + x
        outs.append(y)
    return outs[0] if len(outs) == 1 else jnp.concatenate(outs, axis=0)


def _maxpool2x2(x, H, W, roll_like_jnp):
    """2x2 / stride-2 max pool on a flattened (H*W, C) value -> (H*W/4, C)."""
    HW = H * W
    Ho, Wo = H // 2, W // 2
    # max over the 2x2 window anchored at each row (only anchor rows are kept,
    # so wrapped rows never leak into the result)
    m = jnp.maximum(jnp.maximum(x, _shift_rows(x, 1, roll_like_jnp)),
                    jnp.maximum(_shift_rows(x, W, roll_like_jnp),
                                _shift_rows(x, W + 1, roll_like_jnp)))
    # gather the anchor rows r = 2*ho*W + 2*wo with a 0/1 selection matmul (MXU)
    ti = lax.broadcasted_iota(jnp.int32, (Ho * Wo, HW), 0)
    tj = lax.broadcasted_iota(jnp.int32, (Ho * Wo, HW), 1)
    sel = (tj == (2 * W) * (ti // Wo) + 2 * (ti % Wo)).astype(jnp.float32)
    return jnp.dot(sel, m, preferred_element_type=jnp.float32)


# ------------------------------ fused kernel ----------------------------------

def _make_fused_kernel(H, W, roll_like_jnp):
    def kernel(x_ref,
               w1, b1, w1a, b1a, w1b, b1b,
               w2, b2, w2a, b2a, w2b, b2b,
               wg, bg,
               out_ref):
        x = x_ref[0]                                                # (H*W, Cin)
        x = _conv3x3_relu(x, w1, b1, H, W, roll_like_jnp)           # conv1
        r = _conv3x3_relu(x, w1a, b1a, H, W, roll_like_jnp)         # res1[0]
        x = _conv3x3_relu(r, w1b, b1b, H, W, roll_like_jnp,
                          residual=x)                               # res1[1] + x
        x = _conv3x3_relu(x, w2, b2, H, W, roll_like_jnp)           # conv2
        x = _maxpool2x2(x, H, W, roll_like_jnp)                     # MaxPool2d(2)
        H2, W2 = H // 2, W // 2
        r = _conv3x3_relu(x, w2a, b2a, H2, W2, roll_like_jnp)       # res2[0]
        x = _conv3x3_relu(r, w2b, b2b, H2, W2, roll_like_jnp,
                          residual=x)                               # res2[1] + x
        x = _conv3x3_relu(x, wg, bg, H2, W2, roll_like_jnp)         # global_pool conv
        # AdaptiveMaxPool2d((1,1)) == max over the remaining spatial rows
        out_ref[...] = jnp.max(x, axis=0, keepdims=True).reshape(1, 1, -1)
    return kernel


def small_conv_base_forward(params, x_nchw, out_channels=3, roll_like_jnp=None):
    """Full SmallConv_Base forward as a single fused Pallas call."""
    if roll_like_jnp is None:        # must be resolved outside of jit tracing
        roll_like_jnp = _probe_roll_is_jnp_like()
    N, Cin, H, W = x_nchw.shape
    x = jnp.transpose(x_nchw, (0, 2, 3, 1)).reshape(N, H * W, Cin)  # NCHW->NHWC flat
    x = x.astype(jnp.float32)

    weights = []
    for name in ("conv1", "res1a", "res1b", "conv2", "res2a", "res2b", "gpool"):
        w, b = params[name]
        weights += [w, b]
    cpad = params["gpool"][0].shape[-1]          # lane-padded gpool width (128)

    def const_spec(a):
        nd = a.ndim
        return pl.BlockSpec(a.shape, lambda n, _nd=nd: (0,) * _nd)

    in_specs = [pl.BlockSpec((1, H * W, Cin), lambda n: (n, 0, 0))]
    in_specs += [const_spec(a) for a in weights]

    out = pl.pallas_call(
        _make_fused_kernel(H, W, roll_like_jnp),
        grid=(N,),
        in_specs=in_specs,
        out_specs=pl.BlockSpec((1, 1, cpad), lambda n: (n, 0, 0)),
        out_shape=jax.ShapeDtypeStruct((N, 1, cpad), jnp.float32),
        compiler_params=pltpu.CompilerParams(
            dimension_semantics=("parallel",),          # 2 TCs on v7x
            vmem_limit_bytes=48 * 1024 * 1024),
    )(x, *weights)
    return out.reshape(N, cpad)[:, :out_channels]


# --------------------------- Parameter setup ----------------------------------

def init_conv_bn(key, cin, cout, cout_pad=None):
    """Deterministic Conv(3x3) + BatchNorm (eval mode) params, BN folded into
    the conv weight/bias.  Returns w: (9, cin, cout[_pad]), b: (1, cout[_pad])."""
    kw, kb, kg, kbt, km, kv = jax.random.split(key, 6)
    w = jax.random.normal(kw, (3, 3, cin, cout), jnp.float32) * np.sqrt(2.0 / (9 * cin))
    b = 0.01 * jax.random.normal(kb, (cout,), jnp.float32)
    gamma = 1.0 + 0.1 * jax.random.normal(kg, (cout,), jnp.float32)
    beta = 0.1 * jax.random.normal(kbt, (cout,), jnp.float32)
    mean = 0.1 * jax.random.normal(km, (cout,), jnp.float32)
    var = 1.0 + 0.1 * jax.random.uniform(kv, (cout,), jnp.float32)
    scale = gamma / jnp.sqrt(var + 1e-5)
    w_fold = (w * scale).reshape(9, cin, cout)
    b_fold = ((b - mean) * scale + beta).reshape(1, cout)
    if cout_pad is not None and cout_pad > cout:
        w_fold = jnp.pad(w_fold, ((0, 0), (0, 0), (0, cout_pad - cout)))
        b_fold = jnp.pad(b_fold, ((0, 0), (0, cout_pad - cout)))
    return w_fold, b_fold


def init_params(key, in_channels, conv_size1=64, conv_size2=128, out_channels=3,
                out_pad=128):
    keys = jax.random.split(key, 7)
    return {
        "conv1": init_conv_bn(keys[0], in_channels, conv_size1),
        "res1a": init_conv_bn(keys[1], conv_size1, conv_size1),
        "res1b": init_conv_bn(keys[2], conv_size1, conv_size1),
        "conv2": init_conv_bn(keys[3], conv_size1, conv_size2),
        "res2a": init_conv_bn(keys[4], conv_size2, conv_size2),
        "res2b": init_conv_bn(keys[5], conv_size2, conv_size2),
        # global_pool conv: Cout padded to 128 lanes (zero weights/bias) so the
        # kernel output is lane-dense; sliced back to out_channels outside.
        "gpool": init_conv_bn(keys[6], conv_size2, out_channels, cout_pad=out_pad),
    }


# ------------------------- Pure-JAX reference ----------------------------------

def _ref_conv(x, w9, b, residual=None):
    cin, cout = w9.shape[1], w9.shape[2]
    w = w9.reshape(3, 3, cin, cout)
    y = lax.conv_general_dilated(
        x, w, window_strides=(1, 1), padding="SAME",
        dimension_numbers=("NHWC", "HWIO", "NHWC"),
        precision=lax.Precision.HIGHEST)
    y = jnp.maximum(y + b.reshape(1, 1, 1, cout), 0.0)
    if residual is not None:
        y = y + residual
    return y


def ref_forward(params, x_nchw, out_channels=3):
    x = jnp.transpose(x_nchw, (0, 2, 3, 1)).astype(jnp.float32)
    x = _ref_conv(x, *params["conv1"])
    r = _ref_conv(x, *params["res1a"])
    x = _ref_conv(r, *params["res1b"], residual=x)
    x = _ref_conv(x, *params["conv2"])
    N, H, W, C = x.shape
    x = jnp.max(x.reshape(N, H // 2, 2, W // 2, 2, C), axis=(2, 4))
    r = _ref_conv(x, *params["res2a"])
    x = _ref_conv(r, *params["res2b"], residual=x)
    x = _ref_conv(x, *params["gpool"])
    return jnp.max(x, axis=(1, 2))[:, :out_channels]


# --------------------------------- Main ----------------------------------------

if __name__ == "__main__":
    key = jax.random.PRNGKey(0)
    kx, kp = jax.random.split(key)

    input_shape = (4, 16, 16)    # (C, H, W): n_layers = input_shape[0] = 4
    output_shape = 3             # dipole-moment vector
    batch = 2

    x = jax.random.normal(kx, (batch,) + input_shape, jnp.float32)   # NCHW
    params = init_params(kp, input_shape[0], conv_size1=64, conv_size2=128,
                         out_channels=output_shape)

    roll_like_jnp = _probe_roll_is_jnp_like()   # resolve rotate convention once

    fwd = jax.jit(lambda p, xx: small_conv_base_forward(
        p, xx, out_channels=output_shape, roll_like_jnp=roll_like_jnp))

    out = jax.block_until_ready(fwd(params, x))
    ref = jax.block_until_ready(ref_forward(params, x, output_shape))

    assert out.shape == (batch, output_shape), out.shape
    np.testing.assert_allclose(np.asarray(out), np.asarray(ref),
                               rtol=2e-2, atol=2e-2)
    print("KERNEL_OK")
</pallas_src>

<mosaic_0001>
module attributes {stable_mosaic.version = 11 : i64} {
  func.func @kernel(%arg0: memref<8x128xf32, #tpu.memory_space<vmem>>, %arg1: memref<8x128xf32, #tpu.memory_space<vmem>>) attributes {dimension_semantics = [], scalar_prefetch = 0 : i64, scratch_operands = 0 : i64, tpu.core_type = #tpu.core_type<tc>} {
    %c0 = arith.constant 0 : index
    %c0_0 = arith.constant 0 : index
    %0 = vector.load %arg0[%c0, %c0_0] : memref<8x128xf32, #tpu.memory_space<vmem>>, vector<8x128xf32>
    %c1_i32 = arith.constant 1 : i32
    %1 = tpu.dynamic_rotate %0 by %c1_i32 dim 0 : vector<8x128xf32>, i32 -> vector<8x128xf32>
    %c0_1 = arith.constant 0 : index
    %c0_2 = arith.constant 0 : index
    %2 = vector.load %arg1[%c0_1, %c0_2] : memref<8x128xf32, #tpu.memory_space<vmem>>, vector<8x128xf32>
    tpu.vector_store %arg1[%c0_1, %c0_2], %1 {strides = array<i32>} : memref<8x128xf32, #tpu.memory_space<vmem>>, vector<8x128xf32>,
    return
  }
}

</mosaic_0001>

<bundles_post_ra>
// kernel: tpu_custom_call.1
= control target key start
LH: loop header
LB: loop body
LE: loop exit
PB: predicated region body
PF: predicated region fallthrough
CT: control target
= control target key end

     0   :  { %6 = vsyncpa [#allocation3], 0  ;;  %s103_s0 = inlined_call_operand.hbm [shape: f32[8,128], index: 0, kind: input, shape index: {}]   ;;  %s104_s1 = inlined_call_operand.hbm [shape: f32[8,128], index: 1, kind: output, shape index: {}]  }
   0x1   :  { %7 = vsyncpa [#allocation4], 0  ;;  %s85_s6 = smov [#allocation2]  }
   0x2   :  { %s14_s7 = sshll.u32 %s85_s6, 4  ;;  %s15_s7 = int_to_ptr.vmem [resolvable:$true] %s14_s7 }
   0x3   :  { %s49_s8 = scalar_lea.vmem %s15_s7, 128  ;;  %p54_p1 = scmp.lt.s32.totalorder %s15_s7, %s15_s7 }
   0x4   :  { %p50_p0 = scmp.ne.s32.totalorder %s15_s7, %s49_s8  ;;  %p55_p2 = scmp.lt.s32.totalorder %s49_s8, %s49_s8 }
   0x6   :  { %p56_p3 = por %p55_p2, %p54_p1 }
   0x8   :  { %p57_p4 = pnand %p56_p3, %p50_p0 }
   0xa   :  { %60 = shalt.err (!%p57_p4)
}
   0xb   :  { %17 = dma.hbm_to_vmem [thread:$0]  %s103_s0, 128, %s15_s7, [#allocation3]  }
   0xc   :  { %81 = dma.done.wait [#allocation3], 128  }
   0xd   :  { %82 = vsyncadd [#allocation3], 4294967168  ;;  %s86_s11 = smov [#allocation5]   ;;  %v21_v0 = vld [vmem:[#allocation2] sm:$0xff] }
   0xe   :  { %s30_s12 = sshll.u32 %s86_s11, 4  ;;  %v22_v1 = vrot.slane %v21_v0, 7  ;;  %s31_s12 = int_to_ptr.vmem [resolvable:$true] %s30_s12 }
   0xf   :  { %s61_s13 = scalar_lea.vmem %s31_s12, 128  ;;  %p66_p6 = scmp.lt.s32.totalorder %s31_s12, %s31_s12 }
  0x10   :  { %23 = vst [vmem:[#allocation5] sm:$0xff] %v22_v1  ;;  %p62_p5 = scmp.ne.s32.totalorder %s31_s12, %s61_s13  ;;  %p67_p7 = scmp.lt.s32.totalorder %s61_s13, %s61_s13 }
  0x12   :  { %p68_p8 = por %p67_p7, %p66_p6 }
  0x14   :  { %p69_p9 = pnand %p68_p8, %p62_p5 }
  0x16   :  { %72 = shalt.err (!%p69_p9)
}
  0x17   :  { %33 = dma.vmem_to_hbm [thread:$0]  %s31_s12, 128, %s104_s1, [#allocation4]  }
  0x18   :  { %83 = dma.done.wait [#allocation4], 128  }
  0x19   :  { %84 = vsyncadd [#allocation4], 4294967168 }
  0x1a   :  { %37 = vsyncpa [#allocation3], 1 }
  0x1b   :  { %38 = vsyncpa [#allocation4], 1 }

</bundles_post_ra>
